<compile_context>
chip_gen: v5e
topology: v5e:2x2
jax: 0.10.0
libtpu: 0.0.40
codegen_flags: <defaults>
</compile_context>

<pallas_src>
import functools

import jax
import jax.numpy as jnp
from jax.experimental import pallas as pl
from jax.experimental.pallas import tpu as pltpu

H1 = 80
H2 = 32


def _round_up(x, m):
    return (x + m - 1) // m * m


def _block_diag(*blocks):
    """Small static block-diagonal builder (traced shapes are concrete)."""
    rows = sum(b.shape[0] for b in blocks)
    cols = sum(b.shape[1] for b in blocks)
    out = jnp.zeros((rows, cols), blocks[0].dtype)
    r = c = 0
    for b in blocks:
        out = out.at[r:r + b.shape[0], c:c + b.shape[1]].set(b)
        r += b.shape[0]
        c += b.shape[1]
    return out


def mlp4views_kernel(
    x_ref,     # VMEM (TB, d_all + 3*d)  compute dtype — [x_all | x_ev | x_c1 | x_c2]
    w1_ref,    # VMEM (d_all + 3*d, 4*H1) compute dtype — blockdiag(w1c, w1e, w1e, w1e)
    b1_ref,    # VMEM (1, 4*H1) f32       — [b1_common x80 | b1_each x240]
    w2_ref,    # VMEM (4*H1, 4*H2) compute dtype — blockdiag(w2c, w2e, w2e, w2e)
    b2_ref,    # VMEM (1, 4*H2) f32       — [b2_common x32 | b2_each x96]
    out_ref,   # VMEM (TB, 4*H2) f32      — [l2_common | l2_ev | l2_c1 | l2_c2]
):
    cdt = w1_ref.dtype

    def sigmoid(z):
        # sigmoid(z) = 0.5*tanh(0.5*z) + 0.5  -> single EUP push per vreg
        # (vs. exp + reciprocal = two), and no exp overflow for large |z|.
        # tanh input in the compute dtype -> bf16 EUP path on v6e/v7x; the
        # affine rescale stays in f32 for output precision.
        t = jnp.tanh((z * 0.5).astype(cdt)).astype(jnp.float32)
        return t * 0.5 + 0.5

    # Layer 1: one block-diagonal MXU dot covers common + all three views.
    z1 = jnp.dot(x_ref[...], w1_ref[...], preferred_element_type=jnp.float32)
    l1 = sigmoid(z1 + b1_ref[...])                       # (TB, 320) f32

    # Layer 2: one block-diagonal MXU dot; result is 128 lane-dense f32 lanes.
    z2 = jnp.dot(l1.astype(cdt), w2_ref[...], preferred_element_type=jnp.float32)
    out_ref[...] = sigmoid(z2 + b2_ref[...]).astype(out_ref.dtype)


@functools.partial(jax.jit, static_argnames=("block_batch", "compute_dtype"))
def mlp4views_forward(params, x_all, x_ev, x_c1, x_c2, *,
                      block_batch=1024, compute_dtype=jnp.bfloat16):
    """Returns (layer2_common, offset, mid, mid_couple1, mid_couple2), f32."""
    n, d_all = x_all.shape
    d = x_ev.shape[1]
    h1, h2 = H1, H2
    d_tot = d_all + 3 * d
    cdt = compute_dtype

    # One fused concat+cast pass over the activations (no stack / no pad).
    x_cat = jnp.concatenate([x_all, x_ev, x_c1, x_c2], axis=1).astype(cdt)

    # Block-diagonal fused weights + lane-dense bias rows.
    w1c = params["w1_common"].astype(cdt)
    w2c = params["w2_common"].astype(cdt)
    w1e = params["w1_each_view"].astype(cdt)
    w2e = params["w2_each_view"].astype(cdt)
    w1bd = _block_diag(w1c, w1e, w1e, w1e)               # (d_tot, 320)
    w2bd = _block_diag(w2c, w2e, w2e, w2e)               # (320, 128)

    b = params["biases"].astype(jnp.float32)
    b1row = jnp.concatenate(
        [jnp.broadcast_to(b[0], (h1,)), jnp.broadcast_to(b[2], (3 * h1,))])[None, :]
    b2row = jnp.concatenate(
        [jnp.broadcast_to(b[1], (h2,)), jnp.broadcast_to(b[3], (3 * h2,))])[None, :]

    # Batch tile: multiple of 16 (bf16 sublane packing). Partial tail blocks
    # are handled by Pallas (masked writeback); no padding needed.
    align = 16
    if n <= block_batch:
        tb = n                               # single full-extent block (always legal)
    else:
        tb = _round_up(block_batch, align)
    grid = (pl.cdiv(n, tb),)

    out = pl.pallas_call(
        mlp4views_kernel,
        out_shape=jax.ShapeDtypeStruct((n, 4 * h2), jnp.float32),
        grid_spec=pltpu.PrefetchScalarGridSpec(
            num_scalar_prefetch=0,
            grid=grid,
            in_specs=[
                # batch-tiled, software-pipelined input slab
                pl.BlockSpec((tb, d_tot), lambda i: (i, 0)),
                # weights / biases: constant block index -> resident in VMEM
                pl.BlockSpec(w1bd.shape, lambda i: (0, 0)),
                pl.BlockSpec(b1row.shape, lambda i: (0, 0)),
                pl.BlockSpec(w2bd.shape, lambda i: (0, 0)),
                pl.BlockSpec(b2row.shape, lambda i: (0, 0)),
            ],
            out_specs=pl.BlockSpec((tb, 4 * h2), lambda i: (i, 0)),
        ),
        compiler_params=pltpu.CompilerParams(
            dimension_semantics=("parallel",),
        ),
    )(x_cat, w1bd, b1row, w2bd, b2row)

    l2c = out[:, 0 * h2:1 * h2]
    off = out[:, 1 * h2:2 * h2]
    c1 = out[:, 2 * h2:3 * h2]
    c2 = out[:, 3 * h2:4 * h2]
    return l2c, off, l2c + off, l2c + c1, l2c + c2


def make_params(key, data_dim, data_all_dim):
    k1, k2, k3, k4 = jax.random.split(key, 4)
    return {
        "w1_common": jax.random.normal(k1, (data_all_dim, H1), jnp.float32),
        "w2_common": jax.random.normal(k2, (H1, H2), jnp.float32),
        "w1_each_view": jax.random.normal(k3, (data_dim, H1), jnp.float32),
        "w2_each_view": jax.random.normal(k4, (H1, H2), jnp.float32),
        # [b1_common, b2_common, b1_each_view, b2_each_view] — all init to 0.1
        "biases": jnp.full((4,), 0.1, jnp.float32),
    }


def reference_forward(params, x_all, x_ev, x_c1, x_c2, compute_dtype=jnp.bfloat16):
    """Pure-JAX reference: exact f32 sigmoid on bf16-weight matmuls."""
    b1c, b2c, b1e, b2e = (params["biases"][i] for i in range(4))
    cdt = compute_dtype
    w1c = params["w1_common"].astype(cdt)
    w2c = params["w2_common"].astype(cdt)
    w1e = params["w1_each_view"].astype(cdt)
    w2e = params["w2_each_view"].astype(cdt)
    sig = jax.nn.sigmoid
    dot = lambda a, b: jnp.dot(a, b, preferred_element_type=jnp.float32)

    l1c = sig(dot(x_all.astype(cdt), w1c) + b1c)
    l2c = sig(dot(l1c.astype(cdt), w2c) + b2c)

    def branch(x):
        l1 = sig(dot(x.astype(cdt), w1e) + b1e)
        return sig(dot(l1.astype(cdt), w2e) + b2e)

    l2_ev, l2_c1, l2_c2 = branch(x_ev), branch(x_c1), branch(x_c2)
    return l2c, l2_ev, l2c + l2_ev, l2c + l2_c1, l2c + l2_c2


if __name__ == "__main__":
    # Small deterministic example; batch deliberately not a tile multiple and
    # block_batch=16 to exercise a multi-step grid with a masked partial tail.
    batch = 20
    data_dim = 16
    data_all_dim = 48

    key = jax.random.PRNGKey(0)
    kp, ka, ke, kc1, kc2 = jax.random.split(key, 5)

    params = make_params(kp, data_dim, data_all_dim)
    x_all = jax.random.normal(ka, (batch, data_all_dim), jnp.float32)
    x_ev = jax.random.normal(ke, (batch, data_dim), jnp.float32)
    x_c1 = jax.random.normal(kc1, (batch, data_dim), jnp.float32)
    x_c2 = jax.random.normal(kc2, (batch, data_dim), jnp.float32)

    outs = mlp4views_forward(params, x_all, x_ev, x_c1, x_c2, block_batch=16)
    outs = jax.block_until_ready(outs)

    refs = reference_forward(params, x_all, x_ev, x_c1, x_c2)
    names = ("layer2_common", "offset", "mid", "mid_c1", "mid_c2")
    # Tolerance covers the bf16 compute / bf16-EUP tanh path vs. the exact
    # f32-sigmoid reference.
    for name, o, r in zip(names, outs, refs):
        assert o.shape == r.shape == (batch, H2), (name, o.shape, r.shape)
        assert jnp.allclose(o, r, atol=3e-2, rtol=3e-2), name

    print("KERNEL_OK")
</pallas_src>

<mosaic_0001>
module attributes {stable_mosaic.version = 11 : i64} {
  func.func @mlp4views_kernel(%arg0: i32, %arg1: memref<16x96xbf16, #tpu.memory_space<vmem>>, %arg2: memref<96x320xbf16, #tpu.memory_space<vmem>>, %arg3: memref<1x320xf32, #tpu.memory_space<vmem>>, %arg4: memref<320x128xbf16, #tpu.memory_space<vmem>>, %arg5: memref<1x128xf32, #tpu.memory_space<vmem>>, %arg6: memref<16x128xf32, #tpu.memory_space<vmem>>) attributes {dimension_semantics = [#tpu.dimension_semantics<parallel>], iteration_bounds = array<i64: 2>, scalar_prefetch = 0 : i64, scratch_operands = 0 : i64, tpu.core_type = #tpu.core_type<tc>, window_params = [{transform_indices = @transform_0, window_bounds = array<i64: 16, 96>}, {pipeline_mode = #tpu.pipeline_mode<synchronous>, transform_indices = @transform_1, window_bounds = array<i64: 96, 320>}, {pipeline_mode = #tpu.pipeline_mode<synchronous>, transform_indices = @transform_2, window_bounds = array<i64: 1, 320>}, {pipeline_mode = #tpu.pipeline_mode<synchronous>, transform_indices = @transform_3, window_bounds = array<i64: 320, 128>}, {pipeline_mode = #tpu.pipeline_mode<synchronous>, transform_indices = @transform_4, window_bounds = array<i64: 1, 128>}, {transform_indices = @transform_5, window_bounds = array<i64: 16, 128>}]} {
    %c0 = arith.constant 0 : index
    %c0_0 = arith.constant 0 : index
    %0 = vector.load %arg1[%c0, %c0_0] : memref<16x96xbf16, #tpu.memory_space<vmem>>, vector<16x96xbf16>
    %c0_1 = arith.constant 0 : index
    %c0_2 = arith.constant 0 : index
    %1 = vector.load %arg2[%c0_1, %c0_2] : memref<96x320xbf16, #tpu.memory_space<vmem>>, vector<96x320xbf16>
    %cst = arith.constant dense<0.000000e+00> : vector<16x320xf32>
    %2 = tpu.matmul %0, %1, %cst {dimension_numbers = #tpu.dot_dimension_numbers<[1], [0], [0], [1], [0, 0, 1, 1], [], []>} : vector<16x96xbf16>, vector<96x320xbf16>, vector<16x320xf32> -> vector<16x320xf32>
    %c0_3 = arith.constant 0 : index
    %c0_4 = arith.constant 0 : index
    %3 = vector.load %arg3[%c0_3, %c0_4] : memref<1x320xf32, #tpu.memory_space<vmem>>, vector<1x320xf32>
    %4 = vector.broadcast %3 : vector<1x320xf32> to vector<16x320xf32>
    %5 = arith.addf %2, %4 : vector<16x320xf32>
    %cst_5 = arith.constant 5.000000e-01 : f32
    %6 = vector.broadcast %cst_5 : f32 to vector<16x320xf32>
    %7 = arith.mulf %5, %6 : vector<16x320xf32>
    %8 = arith.truncf %7 : vector<16x320xf32> to vector<16x320xbf16>
    %9 = math.tanh %8 : vector<16x320xbf16>
    %10 = arith.extf %9 : vector<16x320xbf16> to vector<16x320xf32>
    %cst_6 = arith.constant 5.000000e-01 : f32
    %11 = vector.broadcast %cst_6 : f32 to vector<16x320xf32>
    %12 = arith.mulf %10, %11 : vector<16x320xf32>
    %cst_7 = arith.constant 5.000000e-01 : f32
    %13 = vector.broadcast %cst_7 : f32 to vector<16x320xf32>
    %14 = arith.addf %12, %13 : vector<16x320xf32>
    %15 = arith.truncf %14 : vector<16x320xf32> to vector<16x320xbf16>
    %c0_8 = arith.constant 0 : index
    %c0_9 = arith.constant 0 : index
    %16 = vector.load %arg4[%c0_8, %c0_9] : memref<320x128xbf16, #tpu.memory_space<vmem>>, vector<320x128xbf16>
    %cst_10 = arith.constant dense<0.000000e+00> : vector<16x128xf32>
    %17 = tpu.matmul %15, %16, %cst_10 {dimension_numbers = #tpu.dot_dimension_numbers<[1], [0], [0], [1], [0, 0, 1, 1], [], []>} : vector<16x320xbf16>, vector<320x128xbf16>, vector<16x128xf32> -> vector<16x128xf32>
    %c0_11 = arith.constant 0 : index
    %c0_12 = arith.constant 0 : index
    %18 = vector.load %arg5[%c0_11, %c0_12] : memref<1x128xf32, #tpu.memory_space<vmem>>, vector<1x128xf32>
    %19 = vector.broadcast %18 : vector<1x128xf32> to vector<16x128xf32>
    %20 = arith.addf %17, %19 : vector<16x128xf32>
    %cst_13 = arith.constant 5.000000e-01 : f32
    %21 = vector.broadcast %cst_13 : f32 to vector<16x128xf32>
    %22 = arith.mulf %20, %21 : vector<16x128xf32>
    %23 = arith.truncf %22 : vector<16x128xf32> to vector<16x128xbf16>
    %24 = math.tanh %23 : vector<16x128xbf16>
    %25 = arith.extf %24 : vector<16x128xbf16> to vector<16x128xf32>
    %cst_14 = arith.constant 5.000000e-01 : f32
    %26 = vector.broadcast %cst_14 : f32 to vector<16x128xf32>
    %27 = arith.mulf %25, %26 : vector<16x128xf32>
    %cst_15 = arith.constant 5.000000e-01 : f32
    %28 = vector.broadcast %cst_15 : f32 to vector<16x128xf32>
    %29 = arith.addf %27, %28 : vector<16x128xf32>
    %c0_16 = arith.constant 0 : index
    %c0_17 = arith.constant 0 : index
    %30 = vector.load %arg6[%c0_16, %c0_17] : memref<16x128xf32, #tpu.memory_space<vmem>>, vector<16x128xf32>
    tpu.vector_store %arg6[%c0_16, %c0_17], %29 {strides = array<i32>} : memref<16x128xf32, #tpu.memory_space<vmem>>, vector<16x128xf32>,
    return
  }
  func.func @transform_0(%arg0: i32) -> (i32, i32) {
    %c0_i32 = arith.constant 0 : i32
    %c0_i32_0 = arith.constant 0 : i32
    return %arg0, %c0_i32 : i32, i32
  }
  func.func @transform_1(%arg0: i32) -> (i32, i32) {
    %c0_i32 = arith.constant 0 : i32
    %c0_i32_0 = arith.constant 0 : i32
    %c0_i32_1 = arith.constant 0 : i32
    return %c0_i32, %c0_i32_0 : i32, i32
  }
  func.func @transform_2(%arg0: i32) -> (i32, i32) {
    %c0_i32 = arith.constant 0 : i32
    %c0_i32_0 = arith.constant 0 : i32
    %c0_i32_1 = arith.constant 0 : i32
    return %c0_i32, %c0_i32_0 : i32, i32
  }
  func.func @transform_3(%arg0: i32) -> (i32, i32) {
    %c0_i32 = arith.constant 0 : i32
    %c0_i32_0 = arith.constant 0 : i32
    %c0_i32_1 = arith.constant 0 : i32
    return %c0_i32, %c0_i32_0 : i32, i32
  }
  func.func @transform_4(%arg0: i32) -> (i32, i32) {
    %c0_i32 = arith.constant 0 : i32
    %c0_i32_0 = arith.constant 0 : i32
    %c0_i32_1 = arith.constant 0 : i32
    return %c0_i32, %c0_i32_0 : i32, i32
  }
  func.func @transform_5(%arg0: i32) -> (i32, i32) {
    %c0_i32 = arith.constant 0 : i32
    %c0_i32_0 = arith.constant 0 : i32
    return %arg0, %c0_i32 : i32, i32
  }
}

</mosaic_0001>

<bundles_post_ra>
// kernel: mlp4views_forward.1
= control target key start
LH: loop header
LB: loop body
LE: loop exit
PB: predicated region body
PF: predicated region fallthrough
CT: control target
= control target key end

     0   :  { %s1372_s18 = smov 0   ;;  %s1374_s19 = smov 0   ;;  %s1637_s0 = inlined_call_operand.vmem [shape: bf16[20,96], index: 0, kind: input, shape index: {}]   ;;  %s1638_s1 = inlined_call_operand.vmem [shape: bf16[96,320], index: 1, kind: input, shape index: {}]   ;;  %s1639_s2 = inlined_call_operand.vmem [shape: f32[1,320], index: 2, kind: input, shape index: {}]   ;;  %s1640_s3 = inlined_call_operand.vmem [shape: bf16[320,128], index: 3, kind: input, shape index: {}]   ;;  %s1641_s4 = inlined_call_operand.vmem [shape: f32[1,128], index: 4, kind: input, shape index: {}]   ;;  %s1642_s5 = inlined_call_operand.vmem [shape: f32[20,128], index: 5, kind: output, shape index: {}]  }
   0x1   :  { %s1376_s20 = smov 0  }
   0x2 LB: > { %s1385_s21 = sadd.s32 4294967295, %s1308_s20   ;;  %s1387_s22 = sadd.s32 1, %s1308_s20   ;;  %s1308_s20 = sphi %s1376_s20, %s1646_s20   ;;  %s1304_s19 = sphi %s1374_s19, %s1645_s19   ;;  %s1300_s18 = sphi %s1372_s18, %s1644_s18  }
   0x3   : > { %s129_s23 = ssub.s32 %s1308_s20, %s1387_s22  ;;  %s132_s24 = sadd.s32 1, %s1304_s19 }
   0x4   : > { %p130_p0 = scmp.eq.s32.totalorder %s129_s23, 0  ;;  %p142_p1 = scmp.ne.s32.totalorder %s1304_s19, %s1300_s18 }
   0x5   : > { %p143_p2 = scmp.eq.s32.totalorder %s1385_s21, 1  ;;  %p926_p3 = scmp.ge.s32.totalorder %s1308_s20, 1 }
   0x6   : > { %s1395_s25 = scalar_select %p130_p0, %s1304_s19, %s132_s24  }
   0x7   : > { %p1397_p4 = por %p143_p2, %p142_p1  ;;  %p196_p5 = scmp.lt.s32.totalorder %s1308_s20, 3 }
   0x9   : > { %p197_p6 = pnand %p926_p3, %p196_p5 }
   0xa   : > { %s1444_s11 = sshll.u32 (!%p197_p6), %s1385_s21, 1  ;;  %s224_s15 = sand.u32 (!%p197_p6), 1, %s1300_s18  }
   0xb   : > { %200 = sbr.rel (%p197_p6) target bundleno = 428 (0x1ac), region = 40  ;;  %p232_p7 = scmp.lt.s32.totalorder (!%p197_p6), %s1444_s11, 2 }
   0xc   : > { %s927_s16 = sshll.u32 (!%p197_p6), %s224_s15, 4 }
   0xd   : > { %s1592_s17 = scalar_lea.vmem (!%p197_p6), [#allocation2], %s927_s16  }
  0x10   : > { %v996_v0 = vld [vmem:[%s1638_s1 + $0x78] sm:$0xf]  ;;  %v1124_v1 = vld [vmem:[%s1638_s1 + $0x80] sm:$0xf0]  ;;  %v984_v2 = vld [vmem:[%s1638_s1 + $0x60] sm:$0xf] }
  0x11   : > { %v997_v3 = vor.u32 %v1124_v1, %v996_v0  ;;  %v1121_v4 = vld [vmem:[%s1638_s1 + $0x68] sm:$0xf0]  ;;  %v1123_v5 = vld [vmem:[%s1638_s1 + $0x7c] sm:$0xf]  ;;  %v998_v6 = vld [vmem:[%s1638_s1 + $0x84] sm:$0xf0] }
  0x12   : > { %v1001_v7 = vor.u32 %v1123_v5, %v998_v6  ;;  %v1120_v8 = vld [vmem:[%s1638_s1 + $0x64] sm:$0xf]  ;;  %v985_v9 = vor.u32 %v1121_v4, %v984_v2  ;;  %v986_v10 = vld [vmem:[%s1638_s1 + $0x6c] sm:$0xf0]  ;;  %v972_v11 = vld [vmem:[%s1638_s1 + $0x48] sm:$0xf] }
  0x13   : > { %388 = vmatpush.bf16.msra.mxu2 %v997_v3  ;;  %v1118_v12 = vld [vmem:[%s1638_s1 + $0x50] sm:$0xf0]  ;;  %v989_v13 = vor.u32 %v1120_v8, %v986_v10  ;;  %v1117_v14 = vld [vmem:[%s1638_s1 + $0x4c] sm:$0xf]  ;;  %v974_v15 = vld [vmem:[%s1638_s1 + $0x54] sm:$0xf0] }
  0x14   : > { %402 = vmatpush.bf16.msra.mxu1 %v1001_v7  ;;  %v973_v16 = vor.u32 %v1118_v12, %v972_v11  ;;  %v960_v17 = vld [vmem:[%s1638_s1 + $0x30] sm:$0xf]  ;;  %v1115_v18 = vld [vmem:[%s1638_s1 + $0x38] sm:$0xf0]  ;;  %v977_v19 = vor.u32 %v1117_v14, %v974_v15  ;;  %v1114_v20 = vld [vmem:[%s1638_s1 + $0x34] sm:$0xf] }
  0x15   : > { %v962_v21 = vld [vmem:[%s1638_s1 + $0x3c] sm:$0xf0]  ;;  %v961_v22 = vor.u32 %v1115_v18, %v960_v17  ;;  %v948_v23 = vld [vmem:[%s1638_s1 + $0x18] sm:$0xf]  ;;  %v1112_v24 = vld [vmem:[%s1638_s1 + $0x20] sm:$0xf0] }
  0x16   : > { %v965_v25 = vor.u32 %v1114_v20, %v962_v21  ;;  %s233_s24 = scalar_select %p232_p7, %s1444_s11, 2  ;;  %v1111_v26 = vld [vmem:[%s1638_s1 + $0x1c] sm:$0xf]  ;;  %v950_v27 = vld [vmem:[%s1638_s1 + $0x24] sm:$0xf0]  ;;  %v949_v28 = vor.u32 %v1112_v24, %v948_v23  ;;  %vm382_vm0 = vcmask 785408  }
  0x17   : > { %389 = vmatpush.bf16.msra.mxu2 %v985_v9  ;;  %v936_v29 = vld [vmem:[%s1638_s1] sm:$0xf]  ;;  %v1109_v30 = vld [vmem:[%s1638_s1 + $0x8] sm:$0xf0]  ;;  %v953_v32 = vor.u32 %v1111_v26, %v950_v27  ;;  %v1108_v34 = vld [vmem:[%s1638_s1 + $0x4] sm:$0xf] }
  0x18   : > { %403 = vmatpush.bf16.msra.mxu1 %v989_v13  ;;  %v1004_v31 = vld [vmem:[%s1638_s1 + $0x80] sm:$0xf]  ;;  %s929_s13 = sshll.u32 %s233_s24, 2  ;;  %v1125_v33 = vld [vmem:[%s1638_s1 + $0x88] sm:$0xf0]  ;;  %v937_v36 = vor.u32 %v1109_v30, %v936_v29  ;;  %v1133_v55 = vld [vmem:[%s1640_s3 + $0x38] sm:$0xff] }
  0x19   : > { %v938_v35 = vld [vmem:[%s1638_s1 + $0xc] sm:$0xf0]  ;;  %s235_s29 = scalar_lea.vmem %s1637_s0, %s929_s13  ;;  %v1005_v37 = vor.u32 %v1125_v33, %v1004_v31  ;;  %v992_v39 = vld [vmem:[%s1638_s1 + $0x68] sm:$0xf]  ;;  %v1122_v40 = vld [vmem:[%s1638_s1 + $0x70] sm:$0xf0]  ;;  %643 = vmatpush.bf16.msra.mxu3 %v1133_v55 }
  0x1a   : > { %v941_v38 = vor.u32 %v1108_v34, %v938_v35  ;;  %v1107_v41 = vld [vmem:[%s235_s29] sm:$0xff]  ;;  %v993_v42 = vor.u32 %v1122_v40, %v992_v39  ;;  %v980_v43 = vld [vmem:[%s1638_s1 + $0x50] sm:$0xf]  ;;  %v1119_v44 = vld [vmem:[%s1638_s1 + $0x58] sm:$0xf0]  ;;  %vm639_vm1 = vcmask 523264  }
  0x1b   : > { %390 = vmatpush.bf16.msra.mxu2 %v973_v16  ;;  %v981_v45 = vor.u32 %v1119_v44, %v980_v43  ;;  %v968_v46 = vld [vmem:[%s1638_s1 + $0x38] sm:$0xf]  ;;  %v1116_v47 = vld [vmem:[%s1638_s1 + $0x40] sm:$0xf0]  ;;  %v956_v49 = vld [vmem:[%s1638_s1 + $0x20] sm:$0xf] }
  0x1c   : > { %404 = vmatpush.bf16.msra.mxu1 %v977_v19  ;;  %v969_v48 = vor.u32 %v1116_v47, %v968_v46  ;;  %v1113_v50 = vld [vmem:[%s1638_s1 + $0x28] sm:$0xf0]  ;;  %v944_v52 = vld [vmem:[%s1638_s1 + $0x8] sm:$0xf]  ;;  %v1110_v53 = vld [vmem:[%s1638_s1 + $0x10] sm:$0xf0] }
  0x1d   : > { %v957_v51 = vor.u32 %v1113_v50, %v956_v49  ;;  %v945_v54 = vor.u32 %v1110_v53, %v944_v52  ;;  %v1141_v56 = vld [vmem:[%s1640_s3 + $0x78] sm:$0xff]  ;;  %v1132_v57 = vld [vmem:[%s1640_s3 + $0x30] sm:$0xff]  ;;  %v1131_v59 = vld [vmem:[%s1640_s3 + $0x28] sm:$0xff]  ;;  %s711_s18 = ssub.s32 (%p1397_p4), 3, %s1444_s11  ;;  %s1146_s20 = sshll.u32 (%p1397_p4), %s1385_s21, 4 }
  0x1e   : > { %657 = vmatpush.bf16.msra.mxu0 %v1141_v56  ;;  %v1140_v58 = vld [vmem:[%s1640_s3 + $0x70] sm:$0xff]  ;;  %644 = vmatpush.bf16.msra.mxu3 %v1132_v57  ;;  %v1139_v60 = vld [vmem:[%s1640_s3 + $0x68] sm:$0xff]  ;;  %v1130_v61 = vld [vmem:[%s1640_s3 + $0x20] sm:$0xff]  ;;  %p712_p8 = scmp.lt.s32.totalorder (%p1397_p4), %s711_s18, 2  ;;  %s1603_s28 = scalar_lea.vmem (%p1397_p4), %s1642_s5, %s1146_s20  }
  0x1f   : > { %391 = vmatpush.bf16.msra.mxu2 %v961_v22  ;;  %v1138_v62 = vld [vmem:[%s1640_s3 + $0x60] sm:$0xff]  ;;  %v1129_v63 = vld [vmem:[%s1640_s3 + $0x18] sm:$0xff]  ;;  %v1128_v2 = vld [vmem:[%s1640_s3 + $0x10] sm:$0xff] }
  0x20   : > { %405 = vmatpush.bf16.msra.mxu1 %v965_v25  ;;  %v1137_v0 = vld [vmem:[%s1640_s3 + $0x58] sm:$0xff]  ;;  %v1553_v1 = vld [vmem:[%s1639_s2] sm:$0x7]  ;;  %v1136_v3 = vld [vmem:[%s1640_s3 + $0x50] sm:$0xff] }
  0x21   : > { %v276_v4 = vperm.slane %v1553_v1, 1  ;;  %v1127_v5 = vld [vmem:[%s1640_s3 + $0x8] sm:$0xff]  ;;  %v275_v8 = vperm.slane %v1553_v1, 0  ;;  %v1126_v10 = vld [vmem:[%s1640_s3] sm:$0xff]  ;;  %v1145_v21 = vld [vmem:[%s1640_s3 + $0x98] sm:$0xff]  ;;  %v277_v33 = vperm.slane %v1553_v1, 2 }
  0x22   : > { %658 = vmatpush.bf16.msra.mxu0 %v1140_v58  ;;  %645 = vmatpush.bf16.msra.mxu3 %v1131_v59  ;;  %v1135_v6 = vld [vmem:[%s1640_s3 + $0x48] sm:$0xff]  ;;  %v1134_v11 = vld [vmem:[%s1640_s3 + $0x40] sm:$0xff]  ;;  %v1144_v26 = vld [vmem:[%s1640_s3 + $0x90] sm:$0xff] }
  0x23   : > { %392 = vmatpush.bf16.msra.mxu2 %v949_v28  ;;  %v1143_v31 = vld [vmem:[%s1640_s3 + $0x88] sm:$0xff]  ;;  %v1142_v35 = vld [vmem:[%s1640_s3 + $0x80] sm:$0xff] }
  0x24   : > { %406 = vmatpush.bf16.msra.mxu1 %v953_v32 }
  0x26   : > { %659 = vmatpush.bf16.msra.mxu0 %v1139_v60  ;;  %646 = vmatpush.bf16.msra.mxu3 %v1130_v61 }
  0x27   : > { %393 = vmatpush.bf16.msra.mxu2 %v937_v36 }
  0x28   : > { %407 = vmatpush.bf16.msra.mxu1 %v941_v38 }
  0x2a   : > { %1006 = vmatmul.msk.bf16.vlgmr.msra.gmra.mxu2 %vm382_vm0, %v1107_v41  ;;  %660 = vmatpush.bf16.msra.mxu0 %v1138_v62 }
  0x2b   : > { %416 = vmatpush.bf16.msrb.mxu2 %v1005_v37  ;;  %1007 = vmatmul.msk.bf16.vlgmr.msra.gmra.mxu1 %vm382_vm0, %v1107_v41 }
  0x2c   : > { %647 = vmatpush.bf16.msra.mxu3 %v1129_v63  ;;  %675 = vmatpush.bf16.msrb.mxu1 %v1145_v21 }
  0x2e   : > { %661 = vmatpush.bf16.msra.mxu0 %v1137_v0 }
  0x2f   : > { %417 = vmatpush.bf16.msrb.mxu2 %v993_v42 }
  0x30   : > { %648 = vmatpush.bf16.msra.mxu3 %v1128_v2  ;;  %676 = vmatpush.bf16.msrb.mxu1 %v1144_v26 }
  0x32   : > { %662 = vmatpush.bf16.msra.mxu0 %v1136_v3 }
  0x33   : > { %418 = vmatpush.bf16.msrb.mxu2 %v981_v45 }
  0x34   : > { %649 = vmatpush.bf16.msra.mxu3 %v1127_v5  ;;  %677 = vmatpush.bf16.msrb.mxu1 %v1143_v31 }
  0x36   : > { %663 = vmatpush.bf16.msra.mxu0 %v1135_v6 }
  0x37   : > { %419 = vmatpush.bf16.msrb.mxu2 %v969_v48 }
  0x38   : > { %650 = vmatpush.bf16.msra.mxu3 %v1126_v10  ;;  %678 = vmatpush.bf16.msrb.mxu1 %v1142_v35 }
  0x3a   : > { %664 = vmatpush.bf16.msra.mxu0 %v1134_v11  ;;  %v1237_v11 = vld [vmem:[%s1641_s4] ss:$0 sm:$0xff] }
  0x3b   : > { %420 = vmatpush.bf16.msrb.mxu2 %v957_v51 }
  0x3f   : > { %421 = vmatpush.bf16.msrb.mxu2 %v945_v54 }
  0x42   : > { %1008 = vmatmul.msk.bf16.vlgmr.msrb.gmra.mxu2 %vm382_vm0, %v1107_v41 }
  0xa8   : > { %v409_v7 = vpop.f32.mrf.mxu1 }
  0xa9   : > { %v410_v9 = vadd.f32 %v409_v7, %v276_v4 }
  0xab   : > { %v429_v14 = vmul.f32 0.5, %v410_v9 }
  0xad   : > { %v395_v12 = vpop.f32.mrf.mxu2 }
  0xae   : > { %v396_v13 = vadd.f32 %v395_v12, %v275_v8 }
  0xb0   : > { %v428_v15 = vmul.f32 0.5, %v396_v13  ;;  %v411_v16 = vpop.f32.mrf.mxu1 }
  0xb1   : > { %v412_v18 = vadd.f32 %v411_v16, %v276_v4 }
  0xb2   : > { %v434_v17 = vpack.c.bf16 %v429_v14, %v428_v15 }
  0xb3   : > { %v432_v24 = vmul.f32 0.5, %v412_v18 }
  0xb4   : > { %v438_v19 = vunpack.c.l.bf16 %v434_v17  ;;  %v439_v20 = vunpack.c.h.bf16 %v434_v17 }
  0xb5   : > { %v397_v22 = vpop.f32.mrf.mxu2 }
  0xb6   : > { %1238 = vtanh.f32 %v438_v19  ;;  %v398_v23 = vadd.f32 %v397_v22, %v275_v8 }
  0xb7   : > { %1240 = vtanh.f32 %v439_v20 }
  0xb8   : > { %v431_v25 = vmul.f32 0.5, %v398_v23 }
  0xba   : > { %v436_v27 = vpack.c.bf16 %v432_v24, %v431_v25 }
  0xbc   : > { %v1239_v28 = vpop.eup %1238  ;;  %v441_v29 = vunpack.c.l.bf16 %v436_v27  ;;  %v442_v30 = vunpack.c.h.bf16 %v436_v27 }
  0xbd   : > { %v1241_v32 = vpop.eup %1240 }
  0xbe   : > { %1242 = vtanh.f32 %v441_v29  ;;  %v450_v34 = vpack.c.bf16 %v1241_v32, %v1239_v28 }
  0xbf   : > { %1244 = vtanh.f32 %v442_v30 }
  0xc0   : > { %v454_v39 = vunpack.c.l.bf16 %v450_v34  ;;  %v455_v40 = vunpack.c.h.bf16 %v450_v34 }
  0xc2   : > { %v460_v46 = vmul.f32 0.5, %v454_v39  ;;  %v461_v48 = vmul.f32 0.5, %v455_v40 }
  0xc4   : > { %v1243_v38 = vpop.eup %1242  ;;  %v466_v54 = vadd.f32 0.5, %v460_v46  ;;  %v467_v56 = vadd.f32 0.5, %v461_v48 }
  0xc5   : > { %v423_v36 = vpop.f32.mrf.mxu2  ;;  %v1245_v41 = vpop.eup %1244 }
  0xc6   : > { %v424_v37 = vadd.f32 %v423_v36, %v277_v33  ;;  %v452_v43 = vpack.c.bf16 %v1245_v41, %v1243_v38 }
  0xc8   : > { %v430_v42 = vmul.f32 0.5, %v424_v37  ;;  %v457_v45 = vunpack.c.l.bf16 %v452_v43  ;;  %v458_v47 = vunpack.c.h.bf16 %v452_v43 }
  0xca   : > { %v435_v44 = vpack.c.bf16 %v430_v42, %v430_v42  ;;  %v463_v51 = vmul.f32 0.5, %v457_v45  ;;  %v464_v52 = vmul.f32 0.5, %v458_v47 }
  0xcc   : > { %v440_v49 = vunpack.c.l.bf16 %v435_v44  ;;  %v469_v55 = vadd.f32 0.5, %v463_v51  ;;  %v470_v57 = vadd.f32 0.5, %v464_v52 }
  0xcd   : > { %v425_v50 = vpop.f32.mrf.mxu2 }
  0xce   : > { %1246 = vtanh.f32 %v440_v49  ;;  %v426_v53 = vadd.f32 %v425_v50, %v277_v33  ;;  %v472_v59 = vpack.c.bf16 %v469_v55, %v466_v54  ;;  %v473_v60 = vpack.c.bf16 %v470_v57, %v467_v56 }
  0xd0   : > { %v433_v58 = vmul.f32 0.5, %v426_v53  ;;  %651 = vmatmul.bf16.vlgmr.msra.gmra.mxu3 %v472_v59  ;;  %665 = vmatmul.bf16.vlgmr.msra.gmra.mxu0 %v473_v60 }
  0xd2   : > { %v437_v61 = vpack.c.bf16 %v433_v58, %v433_v58 }
  0xd4   : > { %v1247_v62 = vpop.eup %1246  ;;  %v443_v63 = vunpack.c.l.bf16 %v437_v61 }
  0xd5   : > { %v451_v0 = vpack.c.bf16 %v1247_v62, %v1247_v62 }
  0xd6   : > { %1248 = vtanh.f32 %v443_v63 }
  0xd7   : > { %v456_v1 = vunpack.c.l.bf16 %v451_v0 }
  0xd9   : > { %v462_v4 = vmul.f32 0.5, %v456_v1 }
  0xdb   : > { %v468_v7 = vadd.f32 0.5, %v462_v4 }
  0xdc   : > { %v1249_v2 = vpop.eup %1248 }
  0xdd   : > { %v453_v3 = vpack.c.bf16 %v1249_v2, %v1249_v2 }
  0xdf   : > { %v459_v5 = vunpack.c.l.bf16 %v453_v3 }
  0xe1   : > { %v465_v6 = vmul.f32 0.5, %v459_v5 }
  0xe3   : > { %v471_v8 = vadd.f32 0.5, %v465_v6 }
  0xe5   : > { %v474_v9 = vpack.c.bf16 %v471_v8, %v468_v7 }
  0xe7   : > { %1089 = vmatmul.msk.bf16.vlgmr.msrb.gmra.mxu1 %vm639_vm1, %v474_v9 }
 0x14d   : > { %v666_v13 = vpop.f32.mrf.mxu0 }
 0x153   : > { %v652_v10 = vpop.f32.mrf.mxu3 }
 0x154   : > { %v653_v12 = vadd.f32 %v1237_v11, %v652_v10 }
 0x155   : > { %v668_v21 = vpop.f32.mrf.mxu0 }
 0x156   : > { %v667_v14 = vadd.f32 %v666_v13, %v653_v12 }
 0x15b   : > { %v654_v15 = vpop.f32.mrf.mxu3 }
 0x15c   : > { %v655_v18 = vadd.f32 %v1237_v11, %v654_v15 }
 0x15e   : > { %v669_v23 = vadd.f32 %v668_v21, %v655_v18 }
 0x164   : > { %v680_v16 = vpop.f32.mrf.mxu1 }
 0x165   : > { %v681_v17 = vadd.f32 %v680_v16, %v667_v14 }
 0x167   : > { %v685_v19 = vmul.f32 0.5, %v681_v17 }
 0x169   : > { %v687_v20 = vpack.c.bf16 %v685_v19, %v685_v19 }
 0x16b   : > { %v689_v22 = vunpack.c.l.bf16 %v687_v20 }
 0x16c   : > { %v682_v24 = vpop.f32.mrf.mxu1 }
 0x16d   : > { %1250 = vtanh.f32 %v689_v22  ;;  %v683_v25 = vadd.f32 %v682_v24, %v669_v23 }
 0x16f   : > { %v686_v26 = vmul.f32 0.5, %v683_v25 }
 0x171   : > { %v688_v27 = vpack.c.bf16 %v686_v26, %v686_v26 }
 0x173   : > { %v1251_v28 = vpop.eup %1250  ;;  %v690_v29 = vunpack.c.l.bf16 %v688_v27 }
 0x174   : > { %v693_v30 = vpack.c.bf16 %v1251_v28, %v1251_v28 }
 0x175   : > { %1252 = vtanh.f32 %v690_v29 }
 0x176   : > { %v695_v31 = vunpack.c.l.bf16 %v693_v30 }
 0x178   : > { %v697_v32 = vmul.f32 0.5, %v695_v31 }
 0x17a   : > { %v699_v33 = vadd.f32 0.5, %v697_v32 }
 0x17b   : > { %v1253_v34 = vpop.eup %1252 }
 0x17c   : > { %701 = vst [vmem:[%s1592_s17] sm:$0xff] %v699_v33  ;;  %v694_v35 = vpack.c.bf16 %v1253_v34, %v1253_v34 }
 0x17e   : > { %v696_v36 = vunpack.c.l.bf16 %v694_v35 }
 0x180   : > { %v698_v37 = vmul.f32 0.5, %v696_v36  ;;  %709 = sbr.rel (!%p1397_p4) target bundleno = 428 (0x1ac), region = 44 }
 0x182   : > { %v700_v38 = vadd.f32 0.5, %v698_v37 }
 0x184   : > { %702 = vst [vmem:[%s1592_s17 + $0x8] sm:$0xff] %v700_v38 }
 0x185   : > { %s1648_s18 = smov (!%p712_p8, %s711_s18), 2 }
 0x186   : > { %s1092_s29 = sshll.u32 %s1648_s18, 3 }
 0x187   : > { %p1095_p9 = scmp.eq.s32.totalorder %s1092_s29, 0 }
 0x188   : > { %s1609_s24 = sshrl.u32 (!%p1095_p9), %s1648_s18, 1 }
 0x189   : > { %720 = sbr.rel (%p1095_p9) target bundleno = 428 (0x1ac), region = 48  ;;  %p1096_p10 = scmp.le.s32.totalorder (!%p1095_p9), %s1609_s24, 0 }
 0x18e   : > { %879 = sbr.rel (%p1096_p10) target bundleno = 411 (0x19b), region = 124  ;;  %s1310_s21 = smov (!%p1096_p10), %s1603_s28  }
 0x18f   : > { %s1314_s26 = smov (!%p1096_p10), %s1592_s17   ;;  %s1318_s11 = smov (!%p1096_p10), 0  }
 0x190   : > { %s1322_s30 = smov (!%p1096_p10), 0  }
 0x193 LB: >> { %v785_v39 = vld [vmem:[%s1316_s26] sm:$0xff]  ;;  %v787_v40 = vld [vmem:[%s1316_s26 + $0x8] sm:$0xff]  ;;  %s789_s6 = sadd.s32 1, %s1320_s11  ;;  %s779_s30 = sadd.s32 1, %s1324_s30   ;;  %s1324_s30 = sphi %s1322_s30, %s779_s30   ;;  %s1320_s11 = sphi %s1318_s11, %s1319_s11   ;;  %s1316_s26 = sphi %s1314_s26, %s794_s26   ;;  %s1312_s21 = sphi %s1310_s21, %s795_s21  }
 0x194   : >> { %786 = vst [vmem:[%s1312_s21] sm:$0xff] %v785_v39  ;;  %p790_p11 = scmp.ge.s32.totalorder %s789_s6, %s1609_s24  ;;  %p778_p12 = scmp.ge.s32.totalorder %s779_s30, %s1609_s24 }
 0x195   : >> { %788 = vst [vmem:[%s1312_s21 + $0x8] sm:$0xff] %v787_v40 }
 0x196   : >> { %s1650_s6 = smov (%p790_p11, %s789_s6), 0  ;;  %781 = sbr.rel (!%p778_p12) target bundleno = 403 (0x193), region = 130 }
 0x197   : >> { %s1097_s7 = sshll.u32 %s1650_s6, 4  ;;  %s1319_s11 = smov %s1650_s6  }
 0x198   : >> { %s794_s26 = scalar_lea.vmem %s1592_s17, %s1097_s7 [#allocation2]   ;;  %s795_s21 = scalar_lea.vmem %s1603_s28, %s1097_s7  }
 0x19b PF: > { %s1619_s8 = sand.u32 1, %s1648_s18   ;;  %s1147_s9 = sshll.u32 %s1609_s24, 4 }
 0x19c   : > { %s800_s10 = scalar_lea.vmem %s1592_s17, %s1147_s9 [#allocation2]   ;;  %s802_s12 = scalar_lea.vmem %s1603_s28, %s1147_s9  }
 0x19d   : > { %p1102_p13 = scmp.le.s32.totalorder %s1619_s8, 0 }
 0x19e   : > { %s1326_s13 = smov (!%p1102_p13), %s802_s12   ;;  %s1330_s14 = smov (!%p1102_p13), %s800_s10  }
 0x19f   : > { %893 = sbr.rel (%p1102_p13) target bundleno = 428 (0x1ac), region = 135  ;;  %s1334_s15 = smov (!%p1102_p13), 0  }
 0x1a0   : > { %s1338_s16 = smov (!%p1102_p13), 0  }
 0x1a4 LB: >> { %v812_v41 = vld [vmem:[%s1332_s14] sm:$0xff]  ;;  %s814_s18 = sadd.s32 1, %s1336_s15  ;;  %s806_s16 = sadd.s32 1, %s1340_s16   ;;  %s1340_s16 = sphi %s1338_s16, %s806_s16   ;;  %s1336_s15 = sphi %s1334_s15, %s1335_s15   ;;  %s1332_s14 = sphi %s1330_s14, %s819_s14   ;;  %s1328_s13 = sphi %s1326_s13, %s820_s13  }
 0x1a5   : >> { %813 = vst [vmem:[%s1328_s13] sm:$0xff] %v812_v41  ;;  %p815_p0 = scmp.ge.s32.totalorder %s814_s18, %s1619_s8  ;;  %p805_p1 = scmp.ge.s32.totalorder %s806_s16, %s1619_s8 }
 0x1a7   : >> { %s1652_s18 = smov (%p815_p0, %s814_s18), 0  ;;  %808 = sbr.rel (!%p805_p1) target bundleno = 420 (0x1a4), region = 141 }
 0x1a8   : >> { %s1103_s17 = sshll.u32 %s1652_s18, 3  ;;  %s1335_s15 = smov %s1652_s18  }
 0x1a9   : >> { %s819_s14 = scalar_lea.vmem %s800_s10, %s1103_s17 [#allocation2]   ;;  %s820_s13 = scalar_lea.vmem %s802_s12, %s1103_s17  }
 0x1ac PF: > { %p12_p2 = scmp.ge.s32.totalorder %s1387_s22, 4   ;;  %s1644_s18 = smov %s1304_s19 }
 0x1ad   : > { %s1645_s19 = smov %s1395_s25  ;;  %s1646_s20 = smov %s1387_s22 }
 0x1ae   :  { %14 = sbr.rel (!%p12_p2) target bundleno = 2 (0x2), region = 152 }

</bundles_post_ra>
